<compile_context>
chip_gen: v7x
topology: tpu7x:2x2x1
jax: 0.10.0
libtpu: 0.0.40
codegen_flags: <defaults>
</compile_context>

<pallas_src>
import jax
import jax.numpy as jnp
from jax.experimental import pallas as pl
from jax.experimental.pallas import tpu as pltpu


def _cdiv(a, b):
    return -(-a // b)


def _make_agg_classify_kernel(n_g_total, tn, inner, mask_needed):
    """Fused avg-pool (sum over folded-N, 1/N folded into W) + linear classifier."""
    assert tn % inner == 0
    inner_steps = tn // inner

    def kernel(x_ref, wt_ref, b_ref, o_ref, acc_ref):
        # x_ref:  [TB, TN, Dg]   roi chunk (native dtype, lane-folded)
        # wt_ref: [Dg, C_pad]    g-tiled (W^T / N), lane-padded, f32
        # b_ref:  [1, C_pad]     bias, lane-padded, f32
        # o_ref:  [TB, C_pad]    logits tile (resident across the N axis)
        # acc_ref:[TB, Dg]       f32 running sum over N
        k = pl.program_id(1)
        last = pl.num_programs(1) - 1

        @pl.when(k == 0)
        def _init():
            acc_ref[...] = jnp.zeros_like(acc_ref)

        def accumulate_full():
            if inner_steps == 1:
                acc_ref[...] += jnp.sum(x_ref[...].astype(jnp.float32), axis=1)
            else:
                def body(j, carry):
                    start = pl.multiple_of(j * inner, inner)
                    xs = x_ref[:, pl.ds(start, inner), :].astype(jnp.float32)
                    acc_ref[...] += jnp.sum(xs, axis=1)
                    return carry
                jax.lax.fori_loop(0, inner_steps, body, 0, unroll=True)

        def accumulate_masked():
            # Only ever invoked on the last N step; zero out rows past true N.
            valid = n_g_total - k * tn
            if inner_steps == 1:
                x = x_ref[...].astype(jnp.float32)
                idx = jax.lax.broadcasted_iota(jnp.int32, (1, tn, 1), 1)
                acc_ref[...] += jnp.sum(jnp.where(idx < valid, x, 0.0), axis=1)
            else:
                def body(j, carry):
                    start = pl.multiple_of(j * inner, inner)
                    xs = x_ref[:, pl.ds(start, inner), :].astype(jnp.float32)
                    idx = jax.lax.broadcasted_iota(jnp.int32, (1, inner, 1), 1) + start
                    acc_ref[...] += jnp.sum(jnp.where(idx < valid, xs, 0.0), axis=1)
                    return carry
                jax.lax.fori_loop(0, inner_steps, body, 0, unroll=True)

        if mask_needed:
            pl.when(k < last)(accumulate_full)
            pl.when(k == last)(accumulate_masked)
        else:
            accumulate_full()

        @pl.when(k == last)
        def _finalize():
            # Mean scale (1/N) is already folded into wt.
            logits = jnp.dot(acc_ref[...], wt_ref[...],
                             preferred_element_type=jnp.float32)
            o_ref[...] = logits + b_ref[...]

    return kernel


def whole_model_forward(roi, w, b):
    """WholeModel.forward with identity encoder + Pool('avgpool') + Linear.

    roi: [B, N, D] features
    w:   [C, D]    classifier weight (PyTorch nn.Linear convention)
    b:   [C]       classifier bias
    returns (logits [B, C], group_attn=None)
    """
    B, N, D = roi.shape
    C = w.shape[0]
    itemsize = jnp.dtype(roi.dtype).itemsize

    # ---- lane folding for small D: pack g consecutive N rows into the lane dim.
    if D < 128 and 128 % D == 0:
        g = 128 // D
    else:
        g = 1
    N_g = _cdiv(N, g)
    if N_g * g != N:
        # Zero rows contribute 0 to the sum; true N is folded into the weight.
        roi = jnp.pad(roi, ((0, 0), (0, N_g * g - N), (0, 0)))
    Dg = g * D
    roi_g = roi.reshape(B, N_g, Dg)

    # ---- classifier params: fold 1/N and the g-fold replication into the weight.
    C_pad = _cdiv(C, 128) * 128
    wt_block = jnp.transpose(w).astype(jnp.float32) / float(N)          # [D, C]
    wt = jnp.zeros((Dg, C_pad), jnp.float32)
    wt = wt.at[:, :C].set(jnp.tile(wt_block, (g, 1)))                   # [Dg, C_pad]
    b2 = jnp.zeros((1, C_pad), jnp.float32).at[:, :C].set(b.astype(jnp.float32))

    # ---- per-generation VMEM budget.
    try:
        vmem_cap = int(pltpu.get_tpu_info().vmem_capacity_bytes)
    except Exception:
        vmem_cap = 64 * 1024 * 1024  # conservative (v7x-sized)
    if vmem_cap >= 96 * 1024 * 1024:          # v5e / v6e (128 MiB VMEM)
        tile_bytes = 8 * 1024 * 1024
        vmem_limit = 64 * 1024 * 1024
    else:                                      # v7x (64 MiB VMEM per TC)
        tile_bytes = 4 * 1024 * 1024
        vmem_limit = 40 * 1024 * 1024

    # Sublane pack multiple for the native dtype (8 f32 / 16 bf16 / 32 int8).
    sub_mult = max(8, 32 // itemsize)

    # ---- B tile.
    TB = B if B <= 256 else 256
    # Give the parallel B axis >= 2 blocks when feasible (keeps both v7x TCs busy).
    if _cdiv(B, TB) == 1 and B >= 16:
        TB = _cdiv(_cdiv(B, 2), 8) * 8
    # Shrink TB until even the smallest legal N-chunk fits the roi buffer budget.
    while TB > 8 and TB * sub_mult * Dg * itemsize > tile_bytes:
        TB = max(8, _cdiv(TB // 2, 8) * 8)

    # ---- N tile (in folded rows), sized to the per-buffer budget.
    bytes_per_row = max(1, TB * Dg * itemsize)
    TN = max(sub_mult, (tile_bytes // bytes_per_row) // sub_mult * sub_mult)
    if TN >= N_g:
        TN = N_g
        mask_needed = False
    else:
        # Prefer a divisor of N_g (no ragged mask) if it is not too much smaller.
        chosen = None
        cand = TN
        while cand >= sub_mult:
            if N_g % cand == 0:
                chosen = cand
                break
            cand -= sub_mult
        if chosen is not None and chosen * 2 >= TN:
            TN = chosen
            mask_needed = False
        else:
            mask_needed = (N_g % TN) != 0

    # ---- inner accumulation chunk: bound the f32 live value per step (~1 MiB).
    live_budget = 1 * 1024 * 1024
    target_rows = max(1, live_budget // max(1, TB * Dg * 4))
    inner = TN
    if TN > target_rows:
        cand = (min(TN - 1, target_rows) // sub_mult) * sub_mult
        while cand >= sub_mult:
            if TN % cand == 0:
                inner = cand
                break
            cand -= sub_mult

    grid = (_cdiv(B, TB), _cdiv(N_g, TN))
    kernel = _make_agg_classify_kernel(N_g, TN, inner, mask_needed)

    logits_pad = pl.pallas_call(
        kernel,
        out_shape=jax.ShapeDtypeStruct((B, C_pad), jnp.float32),
        grid_spec=pltpu.PrefetchScalarGridSpec(
            num_scalar_prefetch=0,
            grid=grid,
            in_specs=[
                # roi stream: the only large HBM traffic, auto double-buffered.
                pl.BlockSpec((TB, TN, Dg), lambda i, k: (i, k, 0)),
                # grid-invariant weight / bias: single buffer (DMA'd once).
                pl.BlockSpec((Dg, C_pad), lambda i, k: (0, 0),
                             pipeline_mode=pl.Buffered(1)),
                pl.BlockSpec((1, C_pad), lambda i, k: (0, 0),
                             pipeline_mode=pl.Buffered(1)),
            ],
            out_specs=pl.BlockSpec((TB, C_pad), lambda i, k: (i, 0)),
            scratch_shapes=[pltpu.VMEM((TB, Dg), jnp.float32)],
        ),
        compiler_params=pltpu.CompilerParams(
            dimension_semantics=("parallel", "arbitrary"),
            vmem_limit_bytes=vmem_limit,
        ),
    )(roi_g, wt, b2)

    logits = logits_pad[:, :C]
    group_attn = None
    return logits, group_attn


if __name__ == "__main__":
    # Small shapes consistent with the module:
    #   batch B=2, instances N=8, feature dim D = time_length*time_expand = 32,
    #   n_classes C=4.
    B, N, D, C = 2, 8, 32, 4

    key = jax.random.PRNGKey(0)
    k_roi, k_w, k_b = jax.random.split(key, 3)
    roi = jax.random.normal(k_roi, (B, N, D), dtype=jnp.float32)
    w = jax.random.normal(k_w, (C, D), dtype=jnp.float32) * 0.05
    b = jax.random.normal(k_b, (C,), dtype=jnp.float32) * 0.05

    fwd = jax.jit(whole_model_forward)
    logits, group_attn = fwd(roi, w, b)
    logits = jax.block_until_ready(logits)

    # Pure-JAX reference of the fused aggregator + classifier.
    ref = jnp.mean(roi, axis=1) @ w.T + b
    assert logits.shape == (B, C)
    assert group_attn is None
    assert jnp.allclose(logits, ref, atol=1e-4, rtol=1e-4), (
        f"max abs err {jnp.max(jnp.abs(logits - ref))}")

    print("KERNEL_OK")
</pallas_src>

<mosaic_0001>
module attributes {stable_mosaic.version = 11 : i64} {
  func.func @kernel(%arg0: i32, %arg1: i32, %arg2: memref<2x2x128xf32, #tpu.memory_space<vmem>>, %arg3: memref<128x128xf32, #tpu.memory_space<vmem>>, %arg4: memref<1x128xf32, #tpu.memory_space<vmem>>, %arg5: memref<2x128xf32, #tpu.memory_space<vmem>>, %arg6: memref<2x128xf32, #tpu.memory_space<vmem>>) attributes {dimension_semantics = [#tpu.dimension_semantics<parallel>, #tpu.dimension_semantics<arbitrary>], iteration_bounds = array<i64: 1, 1>, scalar_prefetch = 0 : i64, scratch_operands = 1 : i64, tpu.core_type = #tpu.core_type<tc>, window_params = [{transform_indices = @transform_0, window_bounds = array<i64: 2, 2, 128>}, {pipeline_mode = #tpu.pipeline_mode<synchronous>, transform_indices = @transform_1, window_bounds = array<i64: 128, 128>}, {pipeline_mode = #tpu.pipeline_mode<synchronous>, transform_indices = @transform_2, window_bounds = array<i64: 1, 128>}, {transform_indices = @transform_3, window_bounds = array<i64: 2, 128>}]} {
    %c0_i32 = arith.constant 0 : i32
    %0 = arith.cmpi eq, %arg1, %c0_i32 : i32
    %1 = arith.extui %0 : i1 to i32
    %c0_i32_0 = arith.constant 0 : i32
    %2 = arith.cmpi ne, %1, %c0_i32_0 : i32
    scf.if %2 {
      %cst_9 = arith.constant 0.000000e+00 : f32
      %11 = vector.broadcast %cst_9 : f32 to vector<2x128xf32>
      %c0_10 = arith.constant 0 : index
      %c0_11 = arith.constant 0 : index
      %12 = vector.load %arg6[%c0_10, %c0_11] : memref<2x128xf32, #tpu.memory_space<vmem>>, vector<2x128xf32>
      tpu.vector_store %arg6[%c0_10, %c0_11], %11 {strides = array<i32>} : memref<2x128xf32, #tpu.memory_space<vmem>>, vector<2x128xf32>,
    } else {
    }
    %c0 = arith.constant 0 : index
    %c0_1 = arith.constant 0 : index
    %3 = vector.load %arg6[%c0, %c0_1] : memref<2x128xf32, #tpu.memory_space<vmem>>, vector<2x128xf32>
    %c0_2 = arith.constant 0 : index
    %c0_3 = arith.constant 0 : index
    %c0_4 = arith.constant 0 : index
    %4 = vector.load %arg2[%c0_2, %c0_3, %c0_4] : memref<2x2x128xf32, #tpu.memory_space<vmem>>, vector<2x2x128xf32>
    %cst = arith.constant dense<0.000000e+00> : vector<2x128xf32>
    %5 = vector.multi_reduction <add>, %4, %cst [1] : vector<2x2x128xf32> to vector<2x128xf32>
    %6 = arith.addf %3, %5 : vector<2x128xf32>
    %c0_5 = arith.constant 0 : index
    %c0_6 = arith.constant 0 : index
    %7 = vector.load %arg6[%c0_5, %c0_6] : memref<2x128xf32, #tpu.memory_space<vmem>>, vector<2x128xf32>
    tpu.vector_store %arg6[%c0_5, %c0_6], %6 {strides = array<i32>} : memref<2x128xf32, #tpu.memory_space<vmem>>, vector<2x128xf32>,
    %c0_i32_7 = arith.constant 0 : i32
    %8 = arith.cmpi eq, %arg1, %c0_i32_7 : i32
    %9 = arith.extui %8 : i1 to i32
    %c0_i32_8 = arith.constant 0 : i32
    %10 = arith.cmpi ne, %9, %c0_i32_8 : i32
    scf.if %10 {
      %c0_9 = arith.constant 0 : index
      %c0_10 = arith.constant 0 : index
      %11 = vector.load %arg6[%c0_9, %c0_10] : memref<2x128xf32, #tpu.memory_space<vmem>>, vector<2x128xf32>
      %c0_11 = arith.constant 0 : index
      %c0_12 = arith.constant 0 : index
      %12 = vector.load %arg3[%c0_11, %c0_12] : memref<128x128xf32, #tpu.memory_space<vmem>>, vector<128x128xf32>
      %cst_13 = arith.constant dense<0.000000e+00> : vector<2x128xf32>
      %13 = tpu.matmul %11, %12, %cst_13 {dimension_numbers = #tpu.dot_dimension_numbers<[1], [0], [0], [1], [0, 0, 1, 1], [], []>} : vector<2x128xf32>, vector<128x128xf32>, vector<2x128xf32> -> vector<2x128xf32>
      %c0_14 = arith.constant 0 : index
      %c0_15 = arith.constant 0 : index
      %14 = vector.load %arg4[%c0_14, %c0_15] : memref<1x128xf32, #tpu.memory_space<vmem>>, vector<1x128xf32>
      %15 = vector.broadcast %14 : vector<1x128xf32> to vector<2x128xf32>
      %16 = arith.addf %13, %15 : vector<2x128xf32>
      %c0_16 = arith.constant 0 : index
      %c0_17 = arith.constant 0 : index
      %17 = vector.load %arg5[%c0_16, %c0_17] : memref<2x128xf32, #tpu.memory_space<vmem>>, vector<2x128xf32>
      tpu.vector_store %arg5[%c0_16, %c0_17], %16 {strides = array<i32>} : memref<2x128xf32, #tpu.memory_space<vmem>>, vector<2x128xf32>,
    } else {
    }
    return
  }
  func.func @transform_0(%arg0: i32, %arg1: i32) -> (i32, i32, i32) {
    %c0_i32 = arith.constant 0 : i32
    %c0_i32_0 = arith.constant 0 : i32
    return %arg0, %arg1, %c0_i32 : i32, i32, i32
  }
  func.func @transform_1(%arg0: i32, %arg1: i32) -> (i32, i32) {
    %c0_i32 = arith.constant 0 : i32
    %c0_i32_0 = arith.constant 0 : i32
    %c0_i32_1 = arith.constant 0 : i32
    return %c0_i32, %c0_i32_0 : i32, i32
  }
  func.func @transform_2(%arg0: i32, %arg1: i32) -> (i32, i32) {
    %c0_i32 = arith.constant 0 : i32
    %c0_i32_0 = arith.constant 0 : i32
    %c0_i32_1 = arith.constant 0 : i32
    return %c0_i32, %c0_i32_0 : i32, i32
  }
  func.func @transform_3(%arg0: i32, %arg1: i32) -> (i32, i32) {
    %c0_i32 = arith.constant 0 : i32
    %c0_i32_0 = arith.constant 0 : i32
    return %arg0, %c0_i32 : i32, i32
  }
}

</mosaic_0001>

<bundles_post_ra>
// kernel: whole_model_forward.1
= control target key start
LH: loop header
LB: loop body
LE: loop exit
PB: predicated region body
PF: predicated region fallthrough
CT: control target
= control target key end

     0   :  { %v262_v3 = vmov 0.0|0.0   ;;  %v263_v6 = vmov 0.0   ;;  %vm264_vm0 = vmmov 0   ;;  %vm23_vm1 = vcmask 1041408   ;;  %s363_s0 = inlined_call_operand.vmem [shape: f32[2,2,128], index: 0, kind: input, shape index: {}]   ;;  %s364_s1 = inlined_call_operand.vmem [shape: f32[128,128], index: 1, kind: input, shape index: {}]   ;;  %s365_s2 = inlined_call_operand.vmem [shape: f32[1,128], index: 2, kind: input, shape index: {}]   ;;  %s366_s3 = inlined_call_operand.hbm [shape: f32[2,128], index: 3, kind: output, shape index: {}]  }
   0x1   :  { %v49_v0 = vld [vmem:[%s364_s1] sm:$0xff]  ;;  %v50_v1 = vld [vmem:[%s364_s1 + $0x8] sm:$0xff]  ;;  %v51_v2 = vld [vmem:[%s364_s1 + $0x10] sm:$0xff]  ;;  %210 = vmatprep.subr.bf16.mxu0 %v262_v3  ;;  %19 = vst [vmem:[#allocation2] sm:$0x3] %v263_v6  ;;  %207 = vmatprep.mubr.msk.f32.mxu0 %vm264_vm0, %v263_v6 }
   0x2   :  { %v211_v4 = vpack.c.bf16 %v50_v1, %v49_v0  ;;  %v52_v5 = vld [vmem:[%s364_s1 + $0x18] sm:$0xff]  ;;  %v53_v8 = vld [vmem:[%s364_s1 + $0x20] sm:$0xff]  ;;  %v54_v9 = vld [vmem:[%s364_s1 + $0x28] sm:$0xff] }
   0x3   :  { %v214_v7 = vpack.c.bf16 %v52_v5, %v51_v2  ;;  %v21_v10 = vld [vmem:[%s363_s0] sm:$0x3]  ;;  %v22_v11 = vld [vmem:[%s363_s0 + $0x2] sm:$0x3] }
   0x4   :  { %212 = vmatpush3.bf16.msra.mxu0 %v211_v4  ;;  %v24_v12 = vsel %vm23_vm1, %v21_v10, 0.0  ;;  %v31_v13 = vsel %vm23_vm1, %v22_v11, 0.0 }
   0x5   :  { %213 = vmatprep.subr.bf16.mxu0 %v262_v3 }
   0x6   :  { %8 = vsyncpa [#allocation4], 0  ;;  %v217_v14 = vpack.c.bf16 %v54_v9, %v53_v8  ;;  %v25_v15 = vrot.slane %v24_v12, 4  ;;  %v32_v16 = vrot.slane %v31_v13, 4  ;;  %v55_v17 = vld [vmem:[%s364_s1 + $0x30] sm:$0xff]  ;;  %v56_v18 = vld [vmem:[%s364_s1 + $0x38] sm:$0xff] }
   0x7   :  { %v220_v21 = vpack.c.bf16 %v56_v18, %v55_v17  ;;  %v57_v24 = vld [vmem:[%s364_s1 + $0x40] sm:$0xff]  ;;  %v58_v25 = vld [vmem:[%s364_s1 + $0x48] sm:$0xff]  ;;  %v59_v31 = vld [vmem:[%s364_s1 + $0x50] sm:$0xff]  ;;  %vm40_vm2 = vcmask 1041409   ;;  %s265_s22 = smov [#allocation3]  }
   0x8   :  { %215 = vmatpush3.bf16.msra.mxu0 %v214_v7  ;;  %v26_v19 = vadd.f32 %v25_v15, %v24_v12  ;;  %v33_v20 = vadd.f32 %v32_v16, %v31_v13  ;;  %v223_v28 = vpack.c.bf16 %v58_v25, %v57_v24  ;;  %v60_v32 = vld [vmem:[%s364_s1 + $0x58] sm:$0xff]  ;;  %v20_v33 = vld [vmem:[#allocation2] sm:$0x3]  ;;  %v62_v39 = vld [vmem:[%s364_s1 + $0x68] sm:$0xff]  ;;  %s149_s23 = sshll.u32 %s265_s22, 4  ;;  %s150_s23 = int_to_ptr.vmem [resolvable:$true] %s149_s23 }
   0x9   :  { %216 = vmatprep.subr.bf16.mxu0 %v262_v3  ;;  %v226_v36 = vpack.c.bf16 %v60_v32, %v59_v31  ;;  %v61_v38 = vld [vmem:[%s364_s1 + $0x60] sm:$0xff]  ;;  %v63_v42 = vld [vmem:[%s364_s1 + $0x70] sm:$0xff]  ;;  %v64_v43 = vld [vmem:[%s364_s1 + $0x78] sm:$0xff]  ;;  %s238_s24 = scalar_lea.vmem %s150_s23, 32  ;;  %p243_p1 = scmp.lt.s32.totalorder %s150_s23, %s150_s23 }
   0xa   :  { %v27_v22 = vrot.slane %v26_v19, 2  ;;  %v34_v23 = vrot.slane %v33_v20, 2  ;;  %v229_v41 = vpack.c.bf16 %v62_v39, %v61_v38  ;;  %v232_v44 = vpack.c.bf16 %v64_v43, %v63_v42  ;;  %v157_v46 = vld [vmem:[%s365_s2] ss:$0 sm:$0xff]  ;;  %p239_p0 = scmp.ne.s32.totalorder %s150_s23, %s238_s24  ;;  %p244_p2 = scmp.lt.s32.totalorder %s238_s24, %s238_s24 }
   0xc   :  { %218 = vmatpush3.bf16.msra.mxu0 %v217_v14  ;;  %v28_v26 = vadd.f32 %v27_v22, %v26_v19  ;;  %v35_v27 = vadd.f32 %v34_v23, %v33_v20  ;;  %p245_p3 = por %p244_p2, %p243_p1 }
   0xd   :  { %219 = vmatprep.subr.bf16.mxu0 %v262_v3 }
   0xe   :  { %v29_v29 = vrot.slane %v28_v26, 1  ;;  %v36_v30 = vrot.slane %v35_v27, 1  ;;  %p246_p4 = pnand %p245_p3, %p239_p0 }
  0x10   :  { %221 = vmatpush3.bf16.msra.mxu0 %v220_v21  ;;  %v30_v34 = vadd.f32 %v29_v29, %v28_v26  ;;  %v37_v35 = vadd.f32 %v36_v30, %v35_v27 }
  0x11   :  { %222 = vmatprep.subr.bf16.mxu0 %v262_v3 }
  0x12   :  { %v41_v37 = vsel %vm40_vm2, %v37_v35, %v30_v34 }
  0x13   :  { %v43_v40 = vadd.f32 %v41_v37, %v20_v33 }
  0x14   :  { %224 = vmatpush3.bf16.msra.mxu0 %v223_v28 }
  0x15   :  { %225 = vmatprep.subr.bf16.mxu0 %v262_v3  ;;  %44 = vst [vmem:[#allocation2] sm:$0x3] %v43_v40 }
  0x18   :  { %227 = vmatpush3.bf16.msra.mxu0 %v226_v36 }
  0x19   :  { %228 = vmatprep.subr.bf16.mxu0 %v262_v3 }
  0x1c   :  { %230 = vmatpush3.bf16.msra.mxu0 %v229_v41  ;;  %v48_v45 = vld [vmem:[#allocation2] sm:$0x3] }
  0x1d   :  { %231 = vmatprep.subr.bf16.mxu0 %v262_v3 }
  0x20   :  { %233 = vmatpush3.bf16.msra.mxu0 %v232_v44 }
  0x23   :  { %208 = vmatmul.mubr.f32.vlgmr.msra.gmra.mrb[0].mxu0 %v48_v45 }
  0xf6   :  { %v138_v47 = vpop.f32.mrb[0].mxu0 }
  0xf7   :  { %v139_v48 = vadd.f32 %v157_v46, %v138_v47  ;;  %v209_v49 = vpop.f32.mrb[1].mxu0 }
  0xf9   :  { %142 = vst [vmem:[#allocation3] sm:$0x3] %v139_v48 }
  0xfa   :  { %249 = shalt.err (!%p246_p4)
}
  0xfb   :  { %s250_s26 = scalar_lea.hbm %s366_s3, 32 }
  0xfc   :  { %p251_p5 = scmp.ne.s32.totalorder %s366_s3, %s250_s26  ;;  %p254_p6 = scmp.lt.u32.totalorder %s250_s26, %s366_s3 }
  0xfe   :  { %p256_p7 = pnand %p254_p6, %p251_p5 }
 0x100   :  { %259 = shalt.err (!%p256_p7)
}
 0x101   :  { %152 = dma.vmem_to_hbm [thread:$0]  %s150_s23, 32, %s366_s3, [#allocation4]  }
 0x102   :  { %260 = dma.done.wait [#allocation4], 32  }
 0x103   :  { %261 = vsyncadd [#allocation4], 4294967264 }
 0x104   :  { %156 = vsyncpa [#allocation4], 1 }

</bundles_post_ra>
